<compile_context>
chip_gen: v6e
topology: v6e:2x2x1
jax: 0.10.0
libtpu: 0.0.40
codegen_flags: <defaults>
</compile_context>

<pallas_src>
import jax
import jax.numpy as jnp
from jax.experimental import pallas as pl
from jax.experimental.pallas import tpu as pltpu

hidden_layer_dim1 = 32
hidden_layer_dim2 = 8
level_depth = 13
level_height = 8
level_width = 8
IN_DIM = level_width * level_height * level_depth  # 832


def _autoencoder_kernel(x_ref,
                        w1_ref, b1_ref,
                        w2_ref, b2_ref,
                        w3_ref, b3_ref,
                        w4_ref, b4_ref,
                        out_ref):
    x = x_ref[...]          # (TB, 832) float32 tile

    # Hoisted bias loads (each (1, N); broadcasts against the (TB, N) dots).
    b1 = b1_ref[...]
    b2 = b2_ref[...]
    b3 = b3_ref[...]
    b4 = b4_ref[...]

    # encoder: Linear(832 -> 32) + ReLU
    h1 = jnp.dot(x, w1_ref[...], preferred_element_type=jnp.float32) + b1
    h1 = jnp.maximum(h1, 0.0)

    # encoder: Linear(32 -> 8) + ReLU
    h2 = jnp.dot(h1, w2_ref[...], preferred_element_type=jnp.float32) + b2
    h2 = jnp.maximum(h2, 0.0)

    # decoder: Linear(8 -> 32) + ReLU
    h3 = jnp.dot(h2, w3_ref[...], preferred_element_type=jnp.float32) + b3
    h3 = jnp.maximum(h3, 0.0)

    # decoder: Linear(32 -> 832) + ReLU
    h4 = jnp.dot(h3, w4_ref[...], preferred_element_type=jnp.float32) + b4
    out_ref[...] = jnp.maximum(h4, 0.0)


def _round_up(n, m):
    return ((n + m - 1) // m) * m


def autoencoder_forward(x, params, *, batch_tile=512):
    """x: (B, 832) float32. params: dict of weights (in, out) and biases (1, out)."""
    B = x.shape[0]
    w1, b1 = params["w1"], params["b1"]
    w2, b2 = params["w2"], params["b2"]
    w3, b3 = params["w3"], params["b3"]
    w4, b4 = params["w4"], params["b4"]

    # Batch tile: multiple of 8 (f32 sublane), capped by the requested tile
    # size. Per-row computation is independent, so out-of-bounds padding rows
    # in the last (partial) tile are computed on garbage but never stored.
    TB = min(_round_up(B, 8), _round_up(batch_tile, 8))
    grid = (pl.cdiv(B, TB),)

    # Weights/biases: constant index_map -> stay resident in VMEM across steps.
    resident = lambda a: pl.BlockSpec(a.shape, lambda i: tuple(0 for _ in a.shape))

    param_bytes = sum(int(a.size) * a.dtype.itemsize
                      for a in (w1, b1, w2, b2, w3, b3, w4, b4))
    flops_per_row = 2 * (IN_DIM * hidden_layer_dim1
                         + hidden_layer_dim1 * hidden_layer_dim2
                         + hidden_layer_dim2 * hidden_layer_dim1
                         + hidden_layer_dim1 * IN_DIM)
    cost = pl.CostEstimate(
        flops=B * flops_per_row,
        transcendentals=0,
        bytes_accessed=2 * B * IN_DIM * 4 + param_bytes,
    )

    return pl.pallas_call(
        _autoencoder_kernel,
        out_shape=jax.ShapeDtypeStruct((B, IN_DIM), jnp.float32),
        grid=grid,
        in_specs=[pl.BlockSpec((TB, IN_DIM), lambda i: (i, 0)),
                  resident(w1), resident(b1),
                  resident(w2), resident(b2),
                  resident(w3), resident(b3),
                  resident(w4), resident(b4)],
        out_specs=pl.BlockSpec((TB, IN_DIM), lambda i: (i, 0)),
        compiler_params=pltpu.CompilerParams(
            dimension_semantics=("parallel",)),
        cost_estimate=cost,
    )(x, w1, b1, w2, b2, w3, b3, w4, b4)


def init_params(key):
    """Deterministic init mimicking PyTorch's default Linear init:
    U(-1/sqrt(fan_in), 1/sqrt(fan_in)) for both weight and bias.
    Weights stored as (in_features, out_features) so the kernel does x @ W."""
    dims = [(IN_DIM, hidden_layer_dim1),
            (hidden_layer_dim1, hidden_layer_dim2),
            (hidden_layer_dim2, hidden_layer_dim1),
            (hidden_layer_dim1, IN_DIM)]
    params = {}
    keys = jax.random.split(key, 2 * len(dims))
    for i, (fan_in, fan_out) in enumerate(dims):
        bound = 1.0 / jnp.sqrt(jnp.float32(fan_in))
        w = jax.random.uniform(keys[2 * i], (fan_in, fan_out),
                               minval=-bound, maxval=bound, dtype=jnp.float32)
        b = jax.random.uniform(keys[2 * i + 1], (1, fan_out),
                               minval=-bound, maxval=bound, dtype=jnp.float32)
        params[f"w{i + 1}"] = w
        params[f"b{i + 1}"] = b
    return params


def reference_forward(x, params):
    h = jnp.maximum(x @ params["w1"] + params["b1"], 0.0)
    h = jnp.maximum(h @ params["w2"] + params["b2"], 0.0)
    h = jnp.maximum(h @ params["w3"] + params["b3"], 0.0)
    return jnp.maximum(h @ params["w4"] + params["b4"], 0.0)


if __name__ == "__main__":
    key = jax.random.PRNGKey(0)
    pkey, xkey = jax.random.split(key)
    params = init_params(pkey)

    # Small shape consistent with the module: batch=4, feature dim 832.
    B = 4
    x = jax.random.normal(xkey, (B, IN_DIM), dtype=jnp.float32)

    out = autoencoder_forward(x, params)
    out = jax.block_until_ready(out)

    ref = reference_forward(x, params)
    assert out.shape == (B, IN_DIM), out.shape
    assert jnp.allclose(out, ref, atol=1e-4, rtol=1e-4), "mismatch vs reference"

    # Exercise a batch that is not a multiple of the tile size (partial tile).
    B2 = 20
    x2 = jax.random.normal(jax.random.PRNGKey(7), (B2, IN_DIM), dtype=jnp.float32)
    out2 = jax.block_until_ready(autoencoder_forward(x2, params, batch_tile=16))
    ref2 = reference_forward(x2, params)
    assert jnp.allclose(out2, ref2, atol=1e-4, rtol=1e-4), "mismatch (partial tile)"

    print("KERNEL_OK")
</pallas_src>

<mosaic_0001>
module attributes {stable_mosaic.version = 11 : i64} {
  func.func @_autoencoder_kernel(%arg0: i32, %arg1: memref<8x832xf32, #tpu.memory_space<vmem>>, %arg2: memref<832x32xf32, #tpu.memory_space<vmem>>, %arg3: memref<1x32xf32, #tpu.memory_space<vmem>>, %arg4: memref<32x8xf32, #tpu.memory_space<vmem>>, %arg5: memref<1x8xf32, #tpu.memory_space<vmem>>, %arg6: memref<8x32xf32, #tpu.memory_space<vmem>>, %arg7: memref<1x32xf32, #tpu.memory_space<vmem>>, %arg8: memref<32x832xf32, #tpu.memory_space<vmem>>, %arg9: memref<1x832xf32, #tpu.memory_space<vmem>>, %arg10: memref<8x832xf32, #tpu.memory_space<vmem>>) attributes {dimension_semantics = [#tpu.dimension_semantics<parallel>], iteration_bounds = array<i64: 1>, scalar_prefetch = 0 : i64, scratch_operands = 0 : i64, tpu.core_type = #tpu.core_type<tc>, window_params = [{transform_indices = @transform_0, window_bounds = array<i64: 8, 832>}, {pipeline_mode = #tpu.pipeline_mode<synchronous>, transform_indices = @transform_1, window_bounds = array<i64: 832, 32>}, {pipeline_mode = #tpu.pipeline_mode<synchronous>, transform_indices = @transform_2, window_bounds = array<i64: 1, 32>}, {pipeline_mode = #tpu.pipeline_mode<synchronous>, transform_indices = @transform_3, window_bounds = array<i64: 32, 8>}, {pipeline_mode = #tpu.pipeline_mode<synchronous>, transform_indices = @transform_4, window_bounds = array<i64: 1, 8>}, {pipeline_mode = #tpu.pipeline_mode<synchronous>, transform_indices = @transform_5, window_bounds = array<i64: 8, 32>}, {pipeline_mode = #tpu.pipeline_mode<synchronous>, transform_indices = @transform_6, window_bounds = array<i64: 1, 32>}, {pipeline_mode = #tpu.pipeline_mode<synchronous>, transform_indices = @transform_7, window_bounds = array<i64: 32, 832>}, {pipeline_mode = #tpu.pipeline_mode<synchronous>, transform_indices = @transform_8, window_bounds = array<i64: 1, 832>}, {transform_indices = @transform_9, window_bounds = array<i64: 8, 832>}]} {
    %c0 = arith.constant 0 : index
    %c0_0 = arith.constant 0 : index
    %0 = vector.load %arg1[%c0, %c0_0] : memref<8x832xf32, #tpu.memory_space<vmem>>, vector<8x832xf32>
    %c0_1 = arith.constant 0 : index
    %c0_2 = arith.constant 0 : index
    %1 = vector.load %arg3[%c0_1, %c0_2] : memref<1x32xf32, #tpu.memory_space<vmem>>, vector<1x32xf32>
    %c0_3 = arith.constant 0 : index
    %c0_4 = arith.constant 0 : index
    %2 = vector.load %arg5[%c0_3, %c0_4] : memref<1x8xf32, #tpu.memory_space<vmem>>, vector<1x8xf32>
    %c0_5 = arith.constant 0 : index
    %c0_6 = arith.constant 0 : index
    %3 = vector.load %arg7[%c0_5, %c0_6] : memref<1x32xf32, #tpu.memory_space<vmem>>, vector<1x32xf32>
    %c0_7 = arith.constant 0 : index
    %c0_8 = arith.constant 0 : index
    %4 = vector.load %arg9[%c0_7, %c0_8] : memref<1x832xf32, #tpu.memory_space<vmem>>, vector<1x832xf32>
    %c0_9 = arith.constant 0 : index
    %c0_10 = arith.constant 0 : index
    %5 = vector.load %arg2[%c0_9, %c0_10] : memref<832x32xf32, #tpu.memory_space<vmem>>, vector<832x32xf32>
    %cst = arith.constant dense<0.000000e+00> : vector<8x32xf32>
    %6 = tpu.matmul %0, %5, %cst {dimension_numbers = #tpu.dot_dimension_numbers<[1], [0], [0], [1], [0, 0, 1, 1], [], []>} : vector<8x832xf32>, vector<832x32xf32>, vector<8x32xf32> -> vector<8x32xf32>
    %7 = vector.broadcast %1 : vector<1x32xf32> to vector<8x32xf32>
    %8 = arith.addf %6, %7 : vector<8x32xf32>
    %cst_11 = arith.constant 0.000000e+00 : f32
    %9 = vector.broadcast %cst_11 : f32 to vector<8x32xf32>
    %10 = arith.maximumf %8, %9 : vector<8x32xf32>
    %c0_12 = arith.constant 0 : index
    %c0_13 = arith.constant 0 : index
    %11 = vector.load %arg4[%c0_12, %c0_13] : memref<32x8xf32, #tpu.memory_space<vmem>>, vector<32x8xf32>
    %cst_14 = arith.constant dense<0.000000e+00> : vector<8x8xf32>
    %12 = tpu.matmul %10, %11, %cst_14 {dimension_numbers = #tpu.dot_dimension_numbers<[1], [0], [0], [1], [0, 0, 1, 1], [], []>} : vector<8x32xf32>, vector<32x8xf32>, vector<8x8xf32> -> vector<8x8xf32>
    %13 = vector.broadcast %2 : vector<1x8xf32> to vector<8x8xf32>
    %14 = arith.addf %12, %13 : vector<8x8xf32>
    %cst_15 = arith.constant 0.000000e+00 : f32
    %15 = vector.broadcast %cst_15 : f32 to vector<8x8xf32>
    %16 = arith.maximumf %14, %15 : vector<8x8xf32>
    %c0_16 = arith.constant 0 : index
    %c0_17 = arith.constant 0 : index
    %17 = vector.load %arg6[%c0_16, %c0_17] : memref<8x32xf32, #tpu.memory_space<vmem>>, vector<8x32xf32>
    %cst_18 = arith.constant dense<0.000000e+00> : vector<8x32xf32>
    %18 = tpu.matmul %16, %17, %cst_18 {dimension_numbers = #tpu.dot_dimension_numbers<[1], [0], [0], [1], [0, 0, 1, 1], [], []>} : vector<8x8xf32>, vector<8x32xf32>, vector<8x32xf32> -> vector<8x32xf32>
    %19 = vector.broadcast %3 : vector<1x32xf32> to vector<8x32xf32>
    %20 = arith.addf %18, %19 : vector<8x32xf32>
    %cst_19 = arith.constant 0.000000e+00 : f32
    %21 = vector.broadcast %cst_19 : f32 to vector<8x32xf32>
    %22 = arith.maximumf %20, %21 : vector<8x32xf32>
    %c0_20 = arith.constant 0 : index
    %c0_21 = arith.constant 0 : index
    %23 = vector.load %arg8[%c0_20, %c0_21] : memref<32x832xf32, #tpu.memory_space<vmem>>, vector<32x832xf32>
    %cst_22 = arith.constant dense<0.000000e+00> : vector<8x832xf32>
    %24 = tpu.matmul %22, %23, %cst_22 {dimension_numbers = #tpu.dot_dimension_numbers<[1], [0], [0], [1], [0, 0, 1, 1], [], []>} : vector<8x32xf32>, vector<32x832xf32>, vector<8x832xf32> -> vector<8x832xf32>
    %25 = vector.broadcast %4 : vector<1x832xf32> to vector<8x832xf32>
    %26 = arith.addf %24, %25 : vector<8x832xf32>
    %cst_23 = arith.constant 0.000000e+00 : f32
    %27 = vector.broadcast %cst_23 : f32 to vector<8x832xf32>
    %28 = arith.maximumf %26, %27 : vector<8x832xf32>
    %c0_24 = arith.constant 0 : index
    %c0_25 = arith.constant 0 : index
    %29 = vector.load %arg10[%c0_24, %c0_25] : memref<8x832xf32, #tpu.memory_space<vmem>>, vector<8x832xf32>
    tpu.vector_store %arg10[%c0_24, %c0_25], %28 {strides = array<i32>} : memref<8x832xf32, #tpu.memory_space<vmem>>, vector<8x832xf32>,
    return
  }
  func.func @transform_0(%arg0: i32) -> (i32, i32) {
    %c0_i32 = arith.constant 0 : i32
    %c0_i32_0 = arith.constant 0 : i32
    return %arg0, %c0_i32 : i32, i32
  }
  func.func @transform_1(%arg0: i32) -> (i32, i32) {
    %c0_i32 = arith.constant 0 : i32
    %c0_i32_0 = arith.constant 0 : i32
    %c0_i32_1 = arith.constant 0 : i32
    return %c0_i32, %c0_i32_0 : i32, i32
  }
  func.func @transform_2(%arg0: i32) -> (i32, i32) {
    %c0_i32 = arith.constant 0 : i32
    %c0_i32_0 = arith.constant 0 : i32
    %c0_i32_1 = arith.constant 0 : i32
    return %c0_i32, %c0_i32_0 : i32, i32
  }
  func.func @transform_3(%arg0: i32) -> (i32, i32) {
    %c0_i32 = arith.constant 0 : i32
    %c0_i32_0 = arith.constant 0 : i32
    %c0_i32_1 = arith.constant 0 : i32
    return %c0_i32, %c0_i32_0 : i32, i32
  }
  func.func @transform_4(%arg0: i32) -> (i32, i32) {
    %c0_i32 = arith.constant 0 : i32
    %c0_i32_0 = arith.constant 0 : i32
    %c0_i32_1 = arith.constant 0 : i32
    return %c0_i32, %c0_i32_0 : i32, i32
  }
  func.func @transform_5(%arg0: i32) -> (i32, i32) {
    %c0_i32 = arith.constant 0 : i32
    %c0_i32_0 = arith.constant 0 : i32
    %c0_i32_1 = arith.constant 0 : i32
    return %c0_i32, %c0_i32_0 : i32, i32
  }
  func.func @transform_6(%arg0: i32) -> (i32, i32) {
    %c0_i32 = arith.constant 0 : i32
    %c0_i32_0 = arith.constant 0 : i32
    %c0_i32_1 = arith.constant 0 : i32
    return %c0_i32, %c0_i32_0 : i32, i32
  }
  func.func @transform_7(%arg0: i32) -> (i32, i32) {
    %c0_i32 = arith.constant 0 : i32
    %c0_i32_0 = arith.constant 0 : i32
    %c0_i32_1 = arith.constant 0 : i32
    return %c0_i32, %c0_i32_0 : i32, i32
  }
  func.func @transform_8(%arg0: i32) -> (i32, i32) {
    %c0_i32 = arith.constant 0 : i32
    %c0_i32_0 = arith.constant 0 : i32
    %c0_i32_1 = arith.constant 0 : i32
    return %c0_i32, %c0_i32_0 : i32, i32
  }
  func.func @transform_9(%arg0: i32) -> (i32, i32) {
    %c0_i32 = arith.constant 0 : i32
    %c0_i32_0 = arith.constant 0 : i32
    return %arg0, %c0_i32 : i32, i32
  }
}

</mosaic_0001>

<bundles_post_ra>
// kernel: tpu_custom_call.1
= control target key start
LH: loop header
LB: loop body
LE: loop exit
PB: predicated region body
PF: predicated region fallthrough
CT: control target
= control target key end

     0   :  { %14 = vsyncpa [#allocation3], 0  ;;  %vm176_vm0 = vcmask 523264   ;;  %vm1250_vm1 = vmmov 0   ;;  %vm470_vm2 = vcmask 261120   ;;  %vm552_vm3 = vcmask 64512   ;;  %s1784_s0 = inlined_call_operand.vmem [shape: f32[4,832], index: 0, kind: input, shape index: {}]   ;;  %s1785_s1 = inlined_call_operand.vmem [shape: f32[832,32], index: 1, kind: input, shape index: {}]   ;;  %s1786_s2 = inlined_call_operand.vmem [shape: f32[1,32], index: 2, kind: input, shape index: {}]   ;;  %s1787_s3 = inlined_call_operand.vmem [shape: f32[32,8], index: 3, kind: input, shape index: {}]   ;;  %s1788_s4 = inlined_call_operand.vmem [shape: f32[1,8], index: 4, kind: input, shape index: {}]   ;;  %s1789_s5 = inlined_call_operand.vmem [shape: f32[8,32], index: 5, kind: input, shape index: {}]   ;;  %s1790_s6 = inlined_call_operand.vmem [shape: f32[1,32], index: 6, kind: input, shape index: {}]   ;;  %s1791_s7 = inlined_call_operand.vmem [shape: f32[32,832], index: 7, kind: input, shape index: {}]   ;;  %s1792_s8 = inlined_call_operand.vmem [shape: f32[1,832], index: 8, kind: input, shape index: {}]   ;;  %s1793_s9 = inlined_call_operand.hbm [shape: f32[4,832], index: 9, kind: output, shape index: {}]  }
   0x1   :  { %v76_v0 = vld [vmem:[%s1785_s1 + $0xf8] sm:$0xff]  ;;  %v75_v2 = vld [vmem:[%s1785_s1 + $0xf0] sm:$0xff]  ;;  %v74_v6 = vld [vmem:[%s1785_s1 + $0xe8] sm:$0xff]  ;;  %vm1008_vm4 = vcmask 519168  }
   0x2   :  { %v60_v1 = vld [vmem:[%s1785_s1 + $0x78] sm:$0xff]  ;;  %1040 = vmatprep.subr.mxu0 %v76_v0  ;;  %v59_v4 = vld [vmem:[%s1785_s1 + $0x70] sm:$0xff]  ;;  %v58_v8 = vld [vmem:[%s1785_s1 + $0x68] sm:$0xff] }
   0x3   :  { %v108_v3 = vld [vmem:[%s1785_s1 + $0x1f8] sm:$0xff]  ;;  %1041 = vmatpush3.msra.mxu0 %v60_v1  ;;  %v107_v7 = vld [vmem:[%s1785_s1 + $0x1f0] sm:$0xff]  ;;  %v73_v10 = vld [vmem:[%s1785_s1 + $0xe0] sm:$0xff] }
   0x4   :  { %1075 = vmatprep.subr.mxu1 %v108_v3  ;;  %v92_v5 = vld [vmem:[%s1785_s1 + $0x178] sm:$0xff]  ;;  %1042 = vmatprep.subr.mxu0 %v75_v2  ;;  %v91_v9 = vld [vmem:[%s1785_s1 + $0x170] sm:$0xff]  ;;  %v106_v11 = vld [vmem:[%s1785_s1 + $0x1e8] sm:$0xff] }
   0x5   :  { %1076 = vmatpush3.msra.mxu1 %v92_v5  ;;  %1043 = vmatpush3.msra.mxu0 %v59_v4  ;;  %v90_v12 = vld [vmem:[%s1785_s1 + $0x168] sm:$0xff]  ;;  %v57_v13 = vld [vmem:[%s1785_s1 + $0x60] sm:$0xff]  ;;  %v72_v15 = vld [vmem:[%s1785_s1 + $0xd8] sm:$0xff] }
   0x6   :  { %1077 = vmatprep.subr.mxu1 %v107_v7  ;;  %1044 = vmatprep.subr.mxu0 %v74_v6  ;;  %v105_v14 = vld [vmem:[%s1785_s1 + $0x1e0] sm:$0xff]  ;;  %v56_v17 = vld [vmem:[%s1785_s1 + $0x58] sm:$0xff]  ;;  %v71_v19 = vld [vmem:[%s1785_s1 + $0xd0] sm:$0xff] }
   0x7   :  { %1078 = vmatpush3.msra.mxu1 %v91_v9  ;;  %1045 = vmatpush3.msra.mxu0 %v58_v8  ;;  %v89_v16 = vld [vmem:[%s1785_s1 + $0x160] sm:$0xff]  ;;  %v104_v18 = vld [vmem:[%s1785_s1 + $0x1d8] sm:$0xff]  ;;  %v55_v21 = vld [vmem:[%s1785_s1 + $0x50] sm:$0xff] }
   0x8   :  { %1079 = vmatprep.subr.mxu1 %v106_v11  ;;  %1046 = vmatprep.subr.mxu0 %v73_v10  ;;  %v88_v20 = vld [vmem:[%s1785_s1 + $0x158] sm:$0xff]  ;;  %v103_v22 = vld [vmem:[%s1785_s1 + $0x1d0] sm:$0xff]  ;;  %v70_v23 = vld [vmem:[%s1785_s1 + $0xc8] sm:$0xff] }
   0x9   :  { %1080 = vmatpush3.msra.mxu1 %v90_v12  ;;  %1047 = vmatpush3.msra.mxu0 %v57_v13  ;;  %v87_v24 = vld [vmem:[%s1785_s1 + $0x150] sm:$0xff]  ;;  %v54_v25 = vld [vmem:[%s1785_s1 + $0x48] sm:$0xff]  ;;  %v69_v27 = vld [vmem:[%s1785_s1 + $0xc0] sm:$0xff]  ;;  %v1249_v12 = vmov 0.0  }
   0xa   :  { %1081 = vmatprep.subr.mxu1 %v105_v14  ;;  %1048 = vmatprep.subr.mxu0 %v72_v15  ;;  %v102_v26 = vld [vmem:[%s1785_s1 + $0x1c8] sm:$0xff]  ;;  %v53_v29 = vld [vmem:[%s1785_s1 + $0x40] sm:$0xff]  ;;  %v68_v31 = vld [vmem:[%s1785_s1 + $0xb8] sm:$0xff] }
   0xb   :  { %1082 = vmatpush3.msra.mxu1 %v89_v16  ;;  %1049 = vmatpush3.msra.mxu0 %v56_v17  ;;  %v86_v28 = vld [vmem:[%s1785_s1 + $0x148] sm:$0xff]  ;;  %v101_v30 = vld [vmem:[%s1785_s1 + $0x1c0] sm:$0xff]  ;;  %v52_v33 = vld [vmem:[%s1785_s1 + $0x38] sm:$0xff] }
   0xc   :  { %1083 = vmatprep.subr.mxu1 %v104_v18  ;;  %1050 = vmatprep.subr.mxu0 %v71_v19  ;;  %v85_v32 = vld [vmem:[%s1785_s1 + $0x140] sm:$0xff]  ;;  %v100_v34 = vld [vmem:[%s1785_s1 + $0x1b8] sm:$0xff]  ;;  %v67_v35 = vld [vmem:[%s1785_s1 + $0xb0] sm:$0xff] }
   0xd   :  { %1084 = vmatpush3.msra.mxu1 %v88_v20  ;;  %1051 = vmatpush3.msra.mxu0 %v55_v21  ;;  %v84_v36 = vld [vmem:[%s1785_s1 + $0x138] sm:$0xff]  ;;  %v51_v37 = vld [vmem:[%s1785_s1 + $0x30] sm:$0xff]  ;;  %v66_v39 = vld [vmem:[%s1785_s1 + $0xa8] sm:$0xff] }
   0xe   :  { %1085 = vmatprep.subr.mxu1 %v103_v22  ;;  %1052 = vmatprep.subr.mxu0 %v70_v23  ;;  %v99_v38 = vld [vmem:[%s1785_s1 + $0x1b0] sm:$0xff]  ;;  %v50_v41 = vld [vmem:[%s1785_s1 + $0x28] sm:$0xff]  ;;  %v65_v43 = vld [vmem:[%s1785_s1 + $0xa0] sm:$0xff] }
   0xf   :  { %1086 = vmatpush3.msra.mxu1 %v87_v24  ;;  %1053 = vmatpush3.msra.mxu0 %v54_v25  ;;  %v83_v40 = vld [vmem:[%s1785_s1 + $0x130] sm:$0xff]  ;;  %v98_v42 = vld [vmem:[%s1785_s1 + $0x1a8] sm:$0xff]  ;;  %v49_v45 = vld [vmem:[%s1785_s1 + $0x20] sm:$0xff] }
  0x10   :  { %1087 = vmatprep.subr.mxu1 %v102_v26  ;;  %1054 = vmatprep.subr.mxu0 %v69_v27  ;;  %v82_v44 = vld [vmem:[%s1785_s1 + $0x128] sm:$0xff]  ;;  %v97_v46 = vld [vmem:[%s1785_s1 + $0x1a0] sm:$0xff]  ;;  %v64_v47 = vld [vmem:[%s1785_s1 + $0x98] sm:$0xff] }
  0x11   :  { %1088 = vmatpush3.msra.mxu1 %v86_v28  ;;  %1055 = vmatpush3.msra.mxu0 %v53_v29  ;;  %v48_v48 = vld [vmem:[%s1785_s1 + $0x18] sm:$0xff]  ;;  %v81_v49 = vld [vmem:[%s1785_s1 + $0x120] sm:$0xff]  ;;  %v63_v51 = vld [vmem:[%s1785_s1 + $0x90] sm:$0xff] }
  0x12   :  { %1089 = vmatprep.subr.mxu1 %v101_v30  ;;  %1056 = vmatprep.subr.mxu0 %v68_v31  ;;  %v96_v50 = vld [vmem:[%s1785_s1 + $0x198] sm:$0xff]  ;;  %v47_v53 = vld [vmem:[%s1785_s1 + $0x10] sm:$0xff]  ;;  %v62_v55 = vld [vmem:[%s1785_s1 + $0x88] sm:$0xff] }
  0x13   :  { %1090 = vmatpush3.msra.mxu1 %v85_v32  ;;  %1057 = vmatpush3.msra.mxu0 %v52_v33  ;;  %v80_v52 = vld [vmem:[%s1785_s1 + $0x118] sm:$0xff]  ;;  %v95_v54 = vld [vmem:[%s1785_s1 + $0x190] sm:$0xff]  ;;  %v46_v57 = vld [vmem:[%s1785_s1 + $0x8] sm:$0xff] }
  0x14   :  { %1091 = vmatprep.subr.mxu1 %v100_v34  ;;  %1058 = vmatprep.subr.mxu0 %v67_v35  ;;  %v79_v56 = vld [vmem:[%s1785_s1 + $0x110] sm:$0xff]  ;;  %v94_v58 = vld [vmem:[%s1785_s1 + $0x188] sm:$0xff]  ;;  %v1219_v59 = vld [vmem:[%s1784_s0 + $0x4] ss:$28 sps:$4 sm:$0xff]  }
  0x15   :  { %1092 = vmatpush3.msra.mxu1 %v84_v36  ;;  %1059 = vmatpush3.msra.mxu0 %v51_v37  ;;  %v61_v60 = vld [vmem:[%s1785_s1 + $0x80] sm:$0xff]  ;;  %v78_v63 = vld [vmem:[%s1785_s1 + $0x108] sm:$0xff]  ;;  %v140_v1 = vld [vmem:[%s1785_s1 + $0x2f8] sm:$0xff] }
  0x16   :  { %1093 = vmatprep.subr.mxu1 %v99_v38  ;;  %1060 = vmatprep.subr.mxu0 %v66_v39  ;;  %v45_v61 = vld [vmem:[%s1785_s1] sm:$0xff]  ;;  %v1222_v3 = vld [vmem:[%s1784_s0 + $0xc] ss:$28 sps:$4 sm:$0xff]   ;;  %v124_v5 = vld [vmem:[%s1785_s1 + $0x278] sm:$0xff] }
  0x17   :  { %1094 = vmatpush3.msra.mxu1 %v83_v40  ;;  %1061 = vmatpush3.msra.mxu0 %v50_v41  ;;  %v1217_v62 = vld [vmem:[%s1784_s0] ss:$28 sps:$4 sm:$0xff]   ;;  %v1220_v4 = vld [vmem:[%s1784_s0 + $0x8] ss:$28 sps:$4 sm:$0xff]   ;;  %v139_v6 = vld [vmem:[%s1785_s1 + $0x2f0] sm:$0xff] }
  0x18   :  { %1095 = vmatprep.subr.mxu1 %v98_v42  ;;  %1062 = vmatprep.subr.mxu0 %v65_v43  ;;  %v93_v0 = vld [vmem:[%s1785_s1 + $0x180] sm:$0xff]  ;;  %v123_v7 = vld [vmem:[%s1785_s1 + $0x270] sm:$0xff]  ;;  %v138_v8 = vld [vmem:[%s1785_s1 + $0x2e8] sm:$0xff] }
  0x19   :  { %1096 = vmatpush3.msra.mxu1 %v82_v44  ;;  %1063 = vmatpush3.msra.mxu0 %v49_v45  ;;  %v77_v2 = vld [vmem:[%s1785_s1 + $0x100] sm:$0xff]  ;;  %v148_v9 = vld [vmem:[%s1785_s1 + $0x338] sm:$0xff]  ;;  %v122_v10 = vld [vmem:[%s1785_s1 + $0x268] sm:$0xff] }
  0x1a   :  { %1097 = vmatprep.subr.mxu1 %v97_v46  ;;  %1064 = vmatprep.subr.mxu0 %v64_v47  ;;  %v137_v11 = vld [vmem:[%s1785_s1 + $0x2e0] sm:$0xff]  ;;  %v147_v13 = vld [vmem:[%s1785_s1 + $0x330] sm:$0xff]  ;;  %v136_v15 = vld [vmem:[%s1785_s1 + $0x2d8] sm:$0xff] }
  0x1b   :  { %1098 = vmatpush3.msra.mxu1 %v81_v49  ;;  %1065 = vmatpush3.msra.mxu0 %v48_v48  ;;  %v121_v14 = vld [vmem:[%s1785_s1 + $0x260] sm:$0xff]  ;;  %v146_v16 = vld [vmem:[%s1785_s1 + $0x328] sm:$0xff]  ;;  %v120_v17 = vld [vmem:[%s1785_s1 + $0x258] sm:$0xff] }
  0x1c   :  { %1099 = vmatprep.subr.mxu1 %v96_v50  ;;  %1066 = vmatprep.subr.mxu0 %v63_v51  ;;  %v135_v18 = vld [vmem:[%s1785_s1 + $0x2d0] sm:$0xff]  ;;  %v145_v19 = vld [vmem:[%s1785_s1 + $0x320] sm:$0xff]  ;;  %v134_v21 = vld [vmem:[%s1785_s1 + $0x2c8] sm:$0xff] }
  0x1d   :  { %1100 = vmatpush3.msra.mxu1 %v80_v52  ;;  %1067 = vmatpush3.msra.mxu0 %v47_v53  ;;  %v119_v20 = vld [vmem:[%s1785_s1 + $0x250] sm:$0xff]  ;;  %v144_v22 = vld [vmem:[%s1785_s1 + $0x318] sm:$0xff]  ;;  %v118_v23 = vld [vmem:[%s1785_s1 + $0x248] sm:$0xff] }
  0x1e   :  { %1101 = vmatprep.subr.mxu1 %v95_v54  ;;  %1068 = vmatprep.subr.mxu0 %v62_v55  ;;  %v1225_v24 = vld [vmem:[%s1784_s0 + $0x14] ss:$28 sps:$4 sm:$0xff]   ;;  %v133_v25 = vld [vmem:[%s1785_s1 + $0x2c0] sm:$0xff]  ;;  %v132_v28 = vld [vmem:[%s1785_s1 + $0x2b8] sm:$0xff] }
  0x1f   :  { %1102 = vmatpush3.msra.mxu1 %v79_v56  ;;  %1069 = vmatpush3.msra.mxu0 %v46_v57  ;;  %v117_v26 = vld [vmem:[%s1785_s1 + $0x240] sm:$0xff]  ;;  %v143_v27 = vld [vmem:[%s1785_s1 + $0x310] sm:$0xff]  ;;  %v116_v29 = vld [vmem:[%s1785_s1 + $0x238] sm:$0xff] }
  0x20   :  { %1103 = vmatprep.subr.mxu1 %v94_v58  ;;  %1070 = vmatprep.subr.mxu0 %v61_v60  ;;  %v142_v30 = vld [vmem:[%s1785_s1 + $0x308] sm:$0xff]  ;;  %v131_v31 = vld [vmem:[%s1785_s1 + $0x2b0] sm:$0xff]  ;;  %v141_v33 = vld [vmem:[%s1785_s1 + $0x300] sm:$0xff] }
  0x21   :  { %243 = vmatprep.mubr.f32.mxu0 %v1219_v59  ;;  %1071 = vmatpush3.msra.mxu0 %v45_v61  ;;  %v115_v32 = vld [vmem:[%s1785_s1 + $0x230] sm:$0xff]  ;;  %v130_v34 = vld [vmem:[%s1785_s1 + $0x2a8] sm:$0xff]  ;;  %v129_v37 = vld [vmem:[%s1785_s1 + $0x2a0] sm:$0xff] }
  0x22   :  { %1104 = vmatpush3.msra.mxu1 %v78_v63  ;;  %244 = vmatmul.mubr.f32.vlgmr.msra.gmra.mxu0 %v1217_v62  ;;  %v1226_v35 = vld [vmem:[%s1784_s0 + $0x18] ss:$28 sps:$4 sm:$0xff]   ;;  %v114_v36 = vld [vmem:[%s1785_s1 + $0x228] sm:$0xff]  ;;  %v113_v38 = vld [vmem:[%s1785_s1 + $0x220] sm:$0xff] }
  0x23   :  { %1105 = vmatprep.subr.mxu1 %v93_v0  ;;  %1110 = vmatprep.subr.mxu0 %v140_v1  ;;  %v128_v39 = vld [vmem:[%s1785_s1 + $0x298] sm:$0xff]  ;;  %v127_v41 = vld [vmem:[%s1785_s1 + $0x290] sm:$0xff]  ;;  %v126_v43 = vld [vmem:[%s1785_s1 + $0x288] sm:$0xff] }
  0x24   :  { %1106 = vmatpush3.msra.mxu1 %v77_v2  ;;  %313 = vmatprep.mubr.f32.mxu1 %v1222_v3  ;;  %v112_v40 = vld [vmem:[%s1785_s1 + $0x218] sm:$0xff]  ;;  %v111_v42 = vld [vmem:[%s1785_s1 + $0x210] sm:$0xff]  ;;  %v110_v44 = vld [vmem:[%s1785_s1 + $0x208] sm:$0xff] }
  0x25   :  { %1111 = vmatpush3.msra.mxu0 %v124_v5  ;;  %314 = vmatmul.mubr.f32.vlgmr.msra.gmra.mxu1 %v1220_v4  ;;  %v125_v45 = vld [vmem:[%s1785_s1 + $0x280] sm:$0xff]  ;;  %v1223_v47 = vld [vmem:[%s1784_s0 + $0x10] ss:$28 sps:$4 sm:$0xff]   ;;  %v463_v48 = vld [vmem:[%s1787_s3 + $0x18] sm:$0xff] }
  0x26   :  { %1112 = vmatprep.subr.mxu0 %v139_v6  ;;  %1166 = vmatprep.subr.mxu1 %v1249_v12  ;;  %v109_v46 = vld [vmem:[%s1785_s1 + $0x200] sm:$0xff]  ;;  %v462_v49 = vld [vmem:[%s1787_s3 + $0x10] sm:$0xff]  ;;  %v461_v50 = vld [vmem:[%s1787_s3 + $0x8] sm:$0xff] }
  0x27   :  { %1113 = vmatpush3.msra.mxu0 %v123_v7  ;;  %1167 = vmatpush3.msra.mxu1 %v148_v9  ;;  %v460_v51 = vld [vmem:[%s1787_s3] sm:$0xff]  ;;  %v649_v6 = vld [vmem:[%s1791_s7 + $0xb0] sm:$0xff]  ;;  %v644_v9 = vld [vmem:[%s1791_s7 + $0x88] sm:$0xff] }
  0x28   :  { %1114 = vmatprep.subr.mxu0 %v138_v8  ;;  %1168 = vmatprep.subr.mxu1 %v1249_v12  ;;  %v1030_v59 = vld [vmem:[%s1786_s2] ss:$0 sm:$0xff]  ;;  %v650_v8 = vld [vmem:[%s1791_s7 + $0xb8] sm:$0xff] }
  0x29   :  { %1115 = vmatpush3.msra.mxu0 %v122_v10  ;;  %1169 = vmatpush3.msra.mxu1 %v147_v13  ;;  %v545_v5 = vld [vmem:[%s1789_s5] sm:$0xff] }
  0x2a   :  { %1116 = vmatprep.subr.mxu0 %v137_v11  ;;  %1170 = vmatprep.subr.mxu1 %v1249_v12  ;;  %v651_v7 = vld [vmem:[%s1791_s7 + $0xc0] sm:$0xff] }
  0x2b   :  { %1117 = vmatpush3.msra.mxu0 %v121_v14  ;;  %1171 = vmatpush3.msra.mxu1 %v146_v16  ;;  %v643_v10 = vld [vmem:[%s1791_s7 + $0x80] sm:$0xff] }
  0x2c   :  { %1118 = vmatprep.subr.mxu0 %v136_v15  ;;  %1172 = vmatprep.subr.mxu1 %v1249_v12  ;;  %v1032_v11 = vld [vmem:[%s1788_s4] ss:$0 sm:$0xff] }
  0x2d   :  { %1119 = vmatpush3.msra.mxu0 %v120_v17  ;;  %1173 = vmatpush3.msra.mxu1 %v145_v19  ;;  %v648_v17 = vld [vmem:[%s1791_s7 + $0xa8] sm:$0xff]  ;;  %v641_v19 = vld [vmem:[%s1791_s7 + $0x70] sm:$0xff] }
  0x2e   :  { %1120 = vmatprep.subr.mxu0 %v135_v18  ;;  %1174 = vmatprep.subr.mxu1 %v1249_v12  ;;  %v642_v18 = vld [vmem:[%s1791_s7 + $0x78] sm:$0xff] }
  0x2f   :  { %1121 = vmatpush3.msra.mxu0 %v119_v20  ;;  %1175 = vmatpush3.msra.mxu1 %v144_v22  ;;  %v635_v20 = vld [vmem:[%s1791_s7 + $0x40] sm:$0xff]  ;;  %v634_v22 = vld [vmem:[%s1791_s7 + $0x38] sm:$0xff] }
  0x30   :  { %1122 = vmatprep.subr.mxu0 %v134_v21  ;;  %1176 = vmatprep.subr.mxu1 %v1249_v12  ;;  %v637_v21 = vld [vmem:[%s1791_s7 + $0x50] sm:$0xff] }
  0x31   :  { %1123 = vmatpush3.msra.mxu0 %v118_v23  ;;  %383 = vmatprep.mubr.f32.mxu0 %v1225_v24  ;;  %v636_v23 = vld [vmem:[%s1791_s7 + $0x48] sm:$0xff] }
  0x32   :  { %1124 = vmatprep.subr.mxu0 %v133_v25  ;;  %1177 = vmatpush3.msra.mxu1 %v143_v27  ;;  %v628_v24 = vld [vmem:[%s1791_s7 + $0x8] sm:$0xff]  ;;  %v630_v25 = vld [vmem:[%s1791_s7 + $0x18] sm:$0xff]  ;;  %v629_v27 = vld [vmem:[%s1791_s7 + $0x10] sm:$0xff] }
  0x33   :  { %1125 = vmatpush3.msra.mxu0 %v117_v26  ;;  %1178 = vmatprep.subr.mxu1 %v1249_v12  ;;  %v627_v26 = vld [vmem:[%s1791_s7] sm:$0xff] }
  0x34   :  { %1126 = vmatprep.subr.mxu0 %v132_v28  ;;  %1179 = vmatpush3.msra.mxu1 %v142_v30  ;;  %v653_v28 = vld [vmem:[%s1791_s7 + $0xd0] sm:$0xff] }
  0x35   :  { %1127 = vmatpush3.msra.mxu0 %v116_v29  ;;  %1180 = vmatprep.subr.mxu1 %v1249_v12  ;;  %v1034_v29 = vld [vmem:[%s1790_s6] ss:$0 sm:$0xff] }
  0x36   :  { %1128 = vmatprep.subr.mxu0 %v131_v31  ;;  %1181 = vmatpush3.msra.mxu1 %v141_v33 }
  0x37   :  { %1129 = vmatpush3.msra.mxu0 %v115_v32  ;;  %1182 = vmatprep.mubr.msk.f32.mxu1 %vm1250_vm1, %v1249_v12 }
  0x38   :  { %1130 = vmatprep.subr.mxu0 %v130_v34  ;;  %1183 = vmatmul.mubr.msk.f32.vlgmr.msra.gmra.mxu1 %vm176_vm0, %v1226_v35  ;;  %v652_v34 = vld [vmem:[%s1791_s7 + $0xc8] sm:$0xff]  ;;  %v654_v35 = vld [vmem:[%s1791_s7 + $0xd8] sm:$0xff] }
  0x39   :  { %1131 = vmatpush3.msra.mxu0 %v114_v36  ;;  %1185 = vmatprep.subr.mxu1 %v1249_v12  ;;  %v646_v36 = vld [vmem:[%s1791_s7 + $0x98] sm:$0xff] }
  0x3a   :  { %1132 = vmatprep.subr.mxu0 %v129_v37  ;;  %1193 = vmatprep.mubr.msk.f32.mxu1 %vm1250_vm1, %v1249_v12  ;;  %v645_v37 = vld [vmem:[%s1791_s7 + $0x90] sm:$0xff] }
  0x3b   :  { %1133 = vmatpush3.msra.mxu0 %v113_v38  ;;  %1186 = vmatpush3.msra.mxu1 %v463_v48  ;;  %v647_v38 = vld [vmem:[%s1791_s7 + $0xa0] sm:$0xff] }
  0x3c   :  { %1134 = vmatprep.subr.mxu0 %v128_v39  ;;  %1187 = vmatprep.subr.mxu1 %v1249_v12  ;;  %v639_v39 = vld [vmem:[%s1791_s7 + $0x60] sm:$0xff] }
  0x3d   :  { %1135 = vmatpush3.msra.mxu0 %v112_v40  ;;  %1188 = vmatpush3.msra.mxu1 %v462_v49  ;;  %v638_v40 = vld [vmem:[%s1791_s7 + $0x58] sm:$0xff]  ;;  %v44_v49 = vld [vmem:[%s1792_s8] sm:$0x7f] }
  0x3e   :  { %1136 = vmatprep.subr.mxu0 %v127_v41  ;;  %1189 = vmatprep.subr.mxu1 %v1249_v12  ;;  %v640_v41 = vld [vmem:[%s1791_s7 + $0x68] sm:$0xff] }
  0x3f   :  { %1137 = vmatpush3.msra.mxu0 %v111_v42  ;;  %1190 = vmatpush3.msra.mxu1 %v461_v50  ;;  %v632_v42 = vld [vmem:[%s1791_s7 + $0x28] sm:$0xff] }
  0x40   :  { %1138 = vmatprep.subr.mxu0 %v126_v43  ;;  %1191 = vmatprep.subr.mxu1 %v1249_v12  ;;  %v631_v43 = vld [vmem:[%s1791_s7 + $0x20] sm:$0xff] }
  0x41   :  { %1139 = vmatpush3.msra.mxu0 %v110_v44  ;;  %1192 = vmatpush3.msra.mxu1 %v460_v51  ;;  %v633_v44 = vld [vmem:[%s1791_s7 + $0x30] sm:$0xff] }
  0x42   :  { %1140 = vmatprep.subr.mxu0 %v125_v45  ;;  %1196 = vmatprep.subr.mxu1 %v1249_v12  ;;  %v656_v45 = vlaneseq }
  0x43   :  { %1141 = vmatpush3.msra.mxu0 %v109_v46 }
  0x44   :  { %384 = vmatmul.mubr.f32.vlgmr.msra.gmra.mxu0 %v1223_v47  ;;  %789 = vmatprep.subr.mxu0 %v651_v7  ;;  %v657_v46 = vshrl.u32 %v656_v45, 7 }
  0x45   :  { %829 = vmatprep.mubr.f32.mxu0 %v1249_v12  ;;  %790 = vmatpush1.msra.mxu0 %v650_v8 }
  0x46   :  { %791 = vmatprep.subr.mxu0 %v644_v9  ;;  %v658_v47 = vsub.s32 0, %v657_v46  ;;  %v666_v48 = vsub.s32 2, %v657_v46  ;;  %v662_v50 = vsub.s32 1, %v657_v46  ;;  %v670_v51 = vsub.s32 3, %v657_v46 }
  0x47   :  { %792 = vmatpush1.msra.mxu0 %v643_v10 }
  0x48   :  { %793 = vmatprep.subr.mxu0 %v637_v21 }
  0x49   :  { %794 = vmatpush1.msra.mxu0 %v636_v23 }
  0x4a   :  { %795 = vmatprep.subr.mxu0 %v630_v25 }
  0x4b   :  { %796 = vmatpush1.msra.mxu0 %v629_v27 }
  0x4c   :  { %1201 = vmatprep.subr.mxu0 %v1249_v12 }
  0xe2   :  { %v1072_v54 = vpop.f32.mrf.mxu0 }
  0xe4   :  { %v1073_v57 = vpop.f32.mrf.mxu0 }
  0xe5   :  { %v1107_v52 = vpop.f32.mrf.mxu1  ;;  %v1074_v58 = vadd.f32 %v1073_v57, %v1072_v54  ;;  %v663_v54 = vrot.slane %v44_v49, %v662_v50 }
  0xe7   :  { %v1108_v53 = vpop.f32.mrf.mxu1  ;;  %v246_v60 = vadd.f32 %v1074_v58, %v1030_v59 }
  0xe8   :  { %v1109_v61 = vadd.f32 %v1108_v53, %v1107_v52  ;;  %v659_v52 = vrot.slane %v44_v49, %v658_v47  ;;  %v667_v53 = vrot.slane %v44_v49, %v666_v48 }
  0xea   :  { %v316_v0 = vadd.f32 %v1109_v61, %v246_v60  ;;  %v674_v61 = vsub.s32 4, %v657_v46 }
  0xf8   :  { %v455_v55 = vpop.f32.mrf.mxu1 }
  0xfa   :  { %v1184_v56 = vpop.f32.mrf.mxu1 }
 0x104   :  { %v1142_v62 = vpop.f32.mrf.mxu0 }
 0x106   :  { %v1143_v63 = vpop.f32.mrf.mxu0 }
 0x107   :  { %v1144_v1 = vadd.f32 %v1143_v63, %v1142_v62  ;;  %v682_v62 = vsub.s32 6, %v657_v46 }
 0x109   :  { %v386_v2 = vadd.f32 %v1144_v1, %v316_v0  ;;  %v678_v1 = vsub.s32 5, %v657_v46  ;;  %v683_v7 = vrot.slane %v44_v49, %v682_v62 }
 0x10b   :  { %v456_v3 = vadd.f32 %v455_v55, %v386_v2  ;;  %v671_v55 = vrot.slane %v44_v49, %v670_v51 }
 0x10d   :  { %v459_v4 = vmax.f32 %v456_v3, 0.0 }
 0x10f   :  { %1194 = vmatmul.mubr.msk.f32.vlgmr.msra.gmra.mxu1 %vm470_vm2, %v459_v4 }
 0x110   :  { %1198 = vmatprep.mubr.msk.f32.mxu1 %vm1250_vm1, %v1249_v12  ;;  %1197 = vmatpush3.msra.mxu1 %v545_v5 }
 0x111   :  { %718 = vmatprep.subr.mxu1 %v649_v6  ;;  %v675_v6 = vrot.slane %v44_v49, %v674_v61 }
 0x1cf   :  { %v540_v13 = vpop.f32.mrf.mxu1 }
 0x1d0   :  { %v541_v14 = vadd.f32 %v1032_v11, %v540_v13  ;;  %v679_v13 = vrot.slane %v44_v49, %v678_v1 }
 0x1d1   :  { %v1195_v15 = vpop.f32.mrf.mxu1 }
 0x1d2   :  { %v544_v16 = vmax.f32 %v541_v14, 0.0 }
 0x1d4   :  { %1199 = vmatmul.mubr.msk.f32.vlgmr.msra.gmra.mxu1 %vm552_vm3, %v544_v16 }
 0x1d5   :  { %719 = vmatpush1.msra.mxu1 %v648_v17  ;;  %758 = vmatprep.mubr.f32.mxu1 %v1249_v12 }
 0x1d6   :  { %720 = vmatprep.subr.mxu1 %v642_v18 }
 0x1d7   :  { %721 = vmatpush1.msra.mxu1 %v641_v19 }
 0x1d8   :  { %722 = vmatprep.subr.mxu1 %v635_v20 }
 0x1d9   :  { %723 = vmatpush1.msra.mxu1 %v634_v22 }
 0x1da   :  { %724 = vmatprep.subr.mxu1 %v628_v24 }
 0x1db   :  { %725 = vmatpush1.msra.mxu1 %v627_v26 }
 0x1dc   :  { %860 = vmatprep.subr.mxu1 %v653_v28 }
 0x294   :  { %v622_v30 = vpop.f32.mrf.mxu1 }
 0x295   :  { %v623_v31 = vadd.f32 %v1034_v29, %v622_v30 }
 0x296   :  { %v1200_v32 = vpop.f32.mrf.mxu1 }
 0x297   :  { %v626_v33 = vmax.f32 %v623_v31, 0.0 }
 0x299   :  { %1036 = vmatmul.mubr.msk.f32.vlgmr.msra.gmra.mxu1 %vm470_vm2, %v626_v33  ;;  %1037 = vmatmul.mubr.msk.f32.vlgmr.msra.gmra.mxu0 %vm470_vm2, %v626_v33 }
 0x29a   :  { %861 = vmatpush1.msra.mxu1 %v652_v34  ;;  %1202 = vmatpush3.msra.mxu0 %v654_v35 }
 0x29b   :  { %862 = vmatprep.subr.mxu1 %v646_v36  ;;  %1203 = vmatprep.subr.mxu0 %v1249_v12 }
 0x29c   :  { %863 = vmatpush1.msra.mxu1 %v645_v37  ;;  %1204 = vmatpush3.msra.mxu0 %v647_v38 }
 0x29d   :  { %864 = vmatprep.subr.mxu1 %v639_v39  ;;  %1205 = vmatprep.subr.mxu0 %v1249_v12 }
 0x29e   :  { %865 = vmatpush1.msra.mxu1 %v638_v40  ;;  %1206 = vmatpush3.msra.mxu0 %v640_v41 }
 0x29f   :  { %866 = vmatprep.subr.mxu1 %v632_v42  ;;  %1207 = vmatprep.subr.mxu0 %v1249_v12 }
 0x2a0   :  { %867 = vmatpush1.msra.mxu1 %v631_v43  ;;  %900 = vmatprep.mubr.f32.mxu1 %v1249_v12 }
 0x2a1   :  { %1208 = vmatpush3.msra.mxu0 %v633_v44  ;;  %1209 = vmatprep.mubr.msk.f32.mxu0 %vm1250_vm1, %v1249_v12 }
 0x2a2   :  { %1038 = vmatmul.mubr.msk.f32.vlgmr.msra.gmra.mxu1 %vm470_vm2, %v626_v33  ;;  %1210 = vmatmul.mubr.msk.f32.vlgmr.msra.gmra.mxu0 %vm470_vm2, %v626_v33 }
 0x359   :  { %v760_v56 = vpop.f32.mrf.mxu1  ;;  %v831_v12 = vpop.f32.mrf.mxu0 }
 0x35a   :  { %v761_v57 = vadd.f32 %v760_v56, %v659_v52  ;;  %v832_v58 = vadd.f32 %v831_v12, %v667_v53 }
 0x35b   :  { %v762_v59 = vpop.f32.mrf.mxu1  ;;  %v833_v60 = vpop.f32.mrf.mxu0 }
 0x35c   :  { %v763_v63 = vadd.f32 %v762_v59, %v663_v54  ;;  %v834_v0 = vadd.f32 %v833_v60, %v671_v55  ;;  %v977_v2 = vmax.f32 %v761_v57, 0.0  ;;  %v979_v3 = vmax.f32 %v832_v58, 0.0 }
 0x35e   :  { %v978_v4 = vmax.f32 %v763_v63, 0.0  ;;  %v980_v5 = vmax.f32 %v834_v0, 0.0 }
 0x360   :  { %v991_v8 = vcombine.low %v977_v2, %v978_v4  ;;  %v992_v9 = vcombine.high %v977_v2, %v978_v4  ;;  %v993_v10 = vcombine.low %v979_v3, %v980_v5  ;;  %v994_v11 = vcombine.high %v979_v3, %v980_v5 }
 0x362   :  { %1005 = vst [vmem:[#allocation2] sm:$0xff] %v991_v8  ;;  %1010 = vst [vmem:[#allocation2 + $0x1c] sm:$0xff] %v992_v9  ;;  %v902_v14 = vpop.f32.mrf.mxu1  ;;  %v973_v15 = vpop.f32.mrf.mxu0 }
 0x363   :  { %1006 = vst [vmem:[#allocation2 + $0x8] sm:$0xff] %v993_v10  ;;  %1011 = vst [vmem:[#allocation2 + $0x24] sm:$0xff] %v994_v11  ;;  %v903_v16 = vadd.f32 %v902_v14, %v675_v6  ;;  %v974_v17 = vadd.f32 %v973_v15, %v683_v7 }
 0x364   :  { %v904_v18 = vpop.f32.mrf.mxu1  ;;  %v1211_v19 = vpop.f32.mrf.mxu0 }
 0x365   :  { %v983_v20 = vmax.f32 %v974_v17, 0.0  ;;  %v905_v21 = vadd.f32 %v904_v18, %v679_v13  ;;  %v981_v22 = vmax.f32 %v903_v16, 0.0 }
 0x367   :  { %v997_v23 = vcombine.high %v983_v20, %v983_v20  ;;  %1009 = vst.msk [vmem:[#allocation2 + $0x18] sm:$0xf] %vm1008_vm4, %v983_v20  ;;  %v982_v24 = vmax.f32 %v905_v21, 0.0 }
 0x369   :  { %1013 = vst.msk [vmem:[#allocation2 + $0x34] sm:$0xf] %vm1008_vm4, %v997_v23  ;;  %v995_v25 = vcombine.low %v981_v22, %v982_v24  ;;  %v996_v26 = vcombine.high %v981_v22, %v982_v24 }
 0x36b   :  { %1007 = vst [vmem:[#allocation2 + $0x10] sm:$0xff] %v995_v25  ;;  %1012 = vst [vmem:[#allocation2 + $0x2c] sm:$0xff] %v996_v26 }
 0x36c   :  { %1018 = vsyncadd [#allocation3], 448  ;;  %s1251_s8 = smov [#allocation2]  }
 0x36d   :  { %s1019_s14 = sshll.u32 %s1251_s8, 4  ;;  %s1020_s14 = int_to_ptr.vmem [resolvable:$true] %s1019_s14 }
 0x36e   :  { %s1227_s15 = scalar_lea.vmem %s1020_s14, 448  ;;  %s1231_s5 = scalar_lea.vmem %s1020_s14, 896 }
 0x36f   :  { %p1228_p0 = scmp.ne.s32.totalorder %s1020_s14, %s1227_s15  ;;  %p1232_p1 = scmp.lt.s32.totalorder %s1020_s14, %s1020_s14 }
 0x370   :  { %p1233_p2 = scmp.lt.s32.totalorder %s1231_s5, %s1227_s15 }
 0x372   :  { %p1234_p3 = por %p1233_p2, %p1232_p1 }
 0x374   :  { %p1235_p4 = pnand %p1234_p3, %p1228_p0 }
 0x376   :  { %1238 = shalt.err (!%p1235_p4)
}
 0x377   :  { %s1252_s16 = smov 448   ;;  %s1253_s17 = smov 28  }
 0x378   :  { %1025 = dma.vmem_to_hbm [thread:$0]  %s1020_s14, 448, %s1793_s9, [#allocation3], %s1252_s16, %s1252_s16, %s1253_s17  }
 0x379   :  { %1247 = dma.done.wait [#allocation3], 896  }
 0x37a   :  { %1248 = vsyncadd [#allocation3], 4294966400 }
 0x37b   :  { %1029 = vsyncpa [#allocation3], 1 }

</bundles_post_ra>
